<compile_context>
chip_gen: v6e
topology: v6e:2x2x1
jax: 0.10.0
libtpu: 0.0.40
codegen_flags: <defaults>
</compile_context>

<pallas_src>
import jax
import jax.numpy as jnp
from jax.experimental import pallas as pl
from jax.experimental.pallas import tpu as pltpu


def _round_up(x, m):
    return (x + m - 1) // m * m


def _patch_embed_kernel(x_ref, w_ref, b_ref, o_ref):
    # x_ref : (tm, K)   patch rows (compute dtype, e.g. bf16)
    # w_ref : (K, dn)   projection weight slice (row-invariant -> resident)
    # b_ref : (1, dn)   bias, f32 (row-invariant -> resident)
    # o_ref : (tm, dn)
    acc = jnp.dot(x_ref[...], w_ref[...], preferred_element_type=jnp.float32)
    o_ref[...] = (acc + b_ref[...]).astype(o_ref.dtype)


def prepare_patch_embed_params(weight, bias, compute_dtype=jnp.bfloat16):
    """Once-at-init parameter prep (hoisted out of the forward pass).

    Conv weight (D, C, ph, pw) -> (K, D) matmul weight already cast to the
    compute dtype (bf16 by default), bias (D,) -> f32 (1, D).  No K/D padding:
    full-dim blocks are legal in Pallas and standard ViT dims (multiples of
    128) are already lane-dense, so the kernel needs no post-slice pass.
    """
    D, C, ph, pw = weight.shape
    K = C * ph * pw
    w2d = jnp.transpose(weight.reshape(D, K)).astype(compute_dtype)   # (K, D)
    b2d = bias.reshape(1, D).astype(jnp.float32)                      # (1, D)
    return w2d, b2d


def patch_embed_pallas(x, w2d, b2d, patch_size, *, row_tile=1024, out_dtype=None):
    """x: (B, C, H, W) NCHW.  w2d: (K, D) prepared weight (its dtype is the
    compute dtype).  b2d: (1, D) f32 bias.

    Returns (B, num_patches, D) in `out_dtype` (default: compute dtype),
    matching PyTorch's proj(x).flatten(2).transpose(1, 2).
    """
    B, C, H, W = x.shape
    ph, pw = patch_size
    gh, gw = H // ph, W // pw
    num_patches = gh * gw
    K, D = w2d.shape
    compute_dtype = w2d.dtype
    if out_dtype is None:
        out_dtype = compute_dtype

    N = B * num_patches

    # --- patch extraction: a single fused HBM pass ---
    # reshape (bitcast) -> transpose copy with the dtype cast fused into it
    # (no separate pad/convert materializations).
    # TODO(synk): fuse this rearrangement into the kernel (grid over (B, gh))
    # to drop the extra HBM round trip of the input entirely.
    xp = x.reshape(B, C, gh, ph, gw, pw)
    xp = jnp.transpose(xp, (0, 2, 4, 1, 3, 5)).reshape(N, K).astype(compute_dtype)

    # Row tile: large and 256-aligned (v6e/v7x MXU); small inputs collapse to
    # a single tile rounded up to the 8-sublane rule.  Non-divisible N is
    # handled by the cdiv grid (edge block masked by Pallas; each output row
    # depends only on its own input row, so padding rows never pollute results).
    tm = min(row_tile, _round_up(N, 8))
    nr = pl.cdiv(N, tm)

    # Guarantee >= 2 parallel grid steps so both v7x TensorCores get work:
    # if the row axis yields a single tile, split the embed dim into two
    # 128-multiple lane-dense tiles (keeps the resident-weight pattern per core).
    dn = D // 2 if (nr == 1 and D % 256 == 0) else D
    nd = D // dn

    out = pl.pallas_call(
        _patch_embed_kernel,
        out_shape=jax.ShapeDtypeStruct((N, D), out_dtype),
        grid_spec=pltpu.PrefetchScalarGridSpec(
            num_scalar_prefetch=0,
            # Rows are the fastest axis so the weight/bias blocks (indexed by
            # the embed-dim tile only) are DMA'd once per embed-dim tile.
            grid=(nd, nr),
            in_specs=[
                pl.BlockSpec((tm, K), lambda j, i: (i, 0)),
                pl.BlockSpec((K, dn), lambda j, i: (0, j)),   # resident weight
                pl.BlockSpec((1, dn), lambda j, i: (0, j)),   # resident bias
            ],
            out_specs=pl.BlockSpec((tm, dn), lambda j, i: (i, j)),
        ),
        compiler_params=pltpu.CompilerParams(
            dimension_semantics=("parallel", "parallel"),  # megacore-shard tiles
            vmem_limit_bytes=48 * 1024 * 1024,             # fits v7x 64 MiB w/ headroom
        ),
    )(xp, w2d, b2d)

    return out.reshape(B, num_patches, D)


def init_patch_embed_params(key, in_chans, embed_dim, patch_size):
    """Deterministic init mirroring nn.Conv2d default (kaiming-uniform-ish)."""
    ph, pw = patch_size
    fan_in = in_chans * ph * pw
    bound = 1.0 / jnp.sqrt(fan_in)
    kw, kb = jax.random.split(key)
    weight = jax.random.uniform(
        kw, (embed_dim, in_chans, ph, pw), jnp.float32, -bound, bound)
    bias = jax.random.uniform(kb, (embed_dim,), jnp.float32, -bound, bound)
    return weight, bias


if __name__ == "__main__":
    # Small, module-consistent shapes: img 16x16, patch 4x4, 4 channels, 32-dim embed.
    B, C, H, W = 2, 4, 16, 16
    patch_size = (4, 4)
    embed_dim = 32
    num_patches = (H // patch_size[0]) * (W // patch_size[1])

    key = jax.random.PRNGKey(0)
    kx, kp = jax.random.split(key)
    x = jax.random.normal(kx, (B, C, H, W), jnp.float32)
    weight, bias = init_patch_embed_params(kp, C, embed_dim, patch_size)

    # Reference: plain JAX conv (same semantics as nn.Conv2d) + flatten/transpose.
    ref = jax.lax.conv_general_dilated(
        x, weight, window_strides=patch_size, padding="VALID",
        dimension_numbers=("NCHW", "OIHW", "NCHW"))
    ref = ref + bias[None, :, None, None]
    ref = ref.reshape(B, embed_dim, -1).transpose(0, 2, 1)

    # Default path: bf16 compute / bf16 output (mem-bound kernel -> half the bytes).
    w_bf16, b_f32 = prepare_patch_embed_params(weight, bias)  # bf16 by default
    out_bf16 = patch_embed_pallas(x, w_bf16, b_f32, patch_size)
    out_bf16 = jax.block_until_ready(out_bf16)
    assert out_bf16.shape == (B, num_patches, embed_dim)
    assert out_bf16.dtype == jnp.bfloat16
    assert jnp.allclose(out_bf16.astype(jnp.float32), ref, atol=5e-2, rtol=5e-2)

    # f32 compute path: exactness check against the conv reference.
    w_f32, _ = prepare_patch_embed_params(weight, bias, compute_dtype=jnp.float32)
    out_f32 = patch_embed_pallas(x, w_f32, b_f32, patch_size)
    out_f32 = jax.block_until_ready(out_f32)
    assert out_f32.shape == (B, num_patches, embed_dim)
    assert jnp.allclose(out_f32, ref, atol=1e-4, rtol=1e-4)

    print("KERNEL_OK")
</pallas_src>

<mosaic_0001>
module attributes {stable_mosaic.version = 11 : i64} {
  func.func @_patch_embed_kernel(%arg0: i32, %arg1: i32, %arg2: memref<32x64xbf16, #tpu.memory_space<vmem>>, %arg3: memref<64x32xbf16, #tpu.memory_space<vmem>>, %arg4: memref<1x32xf32, #tpu.memory_space<vmem>>, %arg5: memref<32x32xbf16, #tpu.memory_space<vmem>>) attributes {dimension_semantics = [#tpu.dimension_semantics<parallel>, #tpu.dimension_semantics<parallel>], iteration_bounds = array<i64: 1, 1>, scalar_prefetch = 0 : i64, scratch_operands = 0 : i64, tpu.core_type = #tpu.core_type<tc>, window_params = [{transform_indices = @transform_0, window_bounds = array<i64: 32, 64>}, {transform_indices = @transform_1, window_bounds = array<i64: 64, 32>}, {transform_indices = @transform_2, window_bounds = array<i64: 1, 32>}, {transform_indices = @transform_3, window_bounds = array<i64: 32, 32>}]} {
    %c0 = arith.constant 0 : index
    %c0_0 = arith.constant 0 : index
    %0 = vector.load %arg2[%c0, %c0_0] : memref<32x64xbf16, #tpu.memory_space<vmem>>, vector<32x64xbf16>
    %c0_1 = arith.constant 0 : index
    %c0_2 = arith.constant 0 : index
    %1 = vector.load %arg3[%c0_1, %c0_2] : memref<64x32xbf16, #tpu.memory_space<vmem>>, vector<64x32xbf16>
    %cst = arith.constant dense<0.000000e+00> : vector<32x32xf32>
    %2 = tpu.matmul %0, %1, %cst {dimension_numbers = #tpu.dot_dimension_numbers<[1], [0], [0], [1], [0, 0, 1, 1], [], []>} : vector<32x64xbf16>, vector<64x32xbf16>, vector<32x32xf32> -> vector<32x32xf32>
    %c0_3 = arith.constant 0 : index
    %c0_4 = arith.constant 0 : index
    %3 = vector.load %arg4[%c0_3, %c0_4] : memref<1x32xf32, #tpu.memory_space<vmem>>, vector<1x32xf32>
    %4 = vector.broadcast %3 : vector<1x32xf32> to vector<32x32xf32>
    %5 = arith.addf %2, %4 : vector<32x32xf32>
    %6 = arith.truncf %5 : vector<32x32xf32> to vector<32x32xbf16>
    %c0_5 = arith.constant 0 : index
    %c0_6 = arith.constant 0 : index
    %7 = vector.load %arg5[%c0_5, %c0_6] : memref<32x32xbf16, #tpu.memory_space<vmem>>, vector<32x32xbf16>
    tpu.vector_store %arg5[%c0_5, %c0_6], %6 {strides = array<i32>} : memref<32x32xbf16, #tpu.memory_space<vmem>>, vector<32x32xbf16>,
    return
  }
  func.func @transform_0(%arg0: i32, %arg1: i32) -> (i32, i32) {
    %c0_i32 = arith.constant 0 : i32
    %c0_i32_0 = arith.constant 0 : i32
    return %arg1, %c0_i32 : i32, i32
  }
  func.func @transform_1(%arg0: i32, %arg1: i32) -> (i32, i32) {
    %c0_i32 = arith.constant 0 : i32
    %c0_i32_0 = arith.constant 0 : i32
    return %c0_i32, %arg0 : i32, i32
  }
  func.func @transform_2(%arg0: i32, %arg1: i32) -> (i32, i32) {
    %c0_i32 = arith.constant 0 : i32
    %c0_i32_0 = arith.constant 0 : i32
    return %c0_i32, %arg0 : i32, i32
  }
  func.func @transform_3(%arg0: i32, %arg1: i32) -> (i32, i32) {
    %c0_i32 = arith.constant 0 : i32
    return %arg1, %arg0 : i32, i32
  }
}

</mosaic_0001>

<bundles_post_ra>
// kernel: tpu_custom_call.1
= control target key start
LH: loop header
LB: loop body
LE: loop exit
PB: predicated region body
PF: predicated region fallthrough
CT: control target
= control target key end

     0   :  { %vm69_vm0 = vcmask 523264   ;;  %s279_s0 = inlined_call_operand.vmem [shape: bf16[32,64], index: 0, kind: input, shape index: {}]   ;;  %s280_s1 = inlined_call_operand.vmem [shape: bf16[64,32], index: 1, kind: input, shape index: {}]   ;;  %s281_s2 = inlined_call_operand.vmem [shape: f32[1,32], index: 2, kind: input, shape index: {}]   ;;  %s282_s3 = inlined_call_operand.hbm [shape: bf16[32,32], index: 3, kind: output, shape index: {}]  }
   0x1   :  { %v200_v0 = vld [vmem:[%s280_s1 + $0x18] sm:$0xff]   ;;  %v201_v1 = vld [vmem:[%s280_s1 + $0x10] sm:$0xff]   ;;  %v202_v2 = vld [vmem:[%s280_s1 + $0x8] sm:$0xff]  }
   0x2   :  { %185 = vmatprep.subr.bf16.mxu0 %v200_v0  ;;  %v204_v3 = vld [vmem:[%s279_s0] sm:$0xff]  }
   0x3   :  { %186 = vmatpush3.bf16.msra.mxu0 %v200_v0  ;;  %193 = vmatprep.mubr.msk.bf16.mxu0 %vm69_vm0, %v204_v3 }
   0x4   :  { %187 = vmatprep.subr.bf16.mxu0 %v201_v1 }
   0x5   :  { %8 = vsyncpa [#allocation3], 0  ;;  %v203_v4 = vld [vmem:[%s280_s1] sm:$0xff]   ;;  %v205_v5 = vld [vmem:[%s279_s0 + $0x8] sm:$0xff]   ;;  %vm141_vm1 = vcmask 257024   ;;  %s228_s1 = smov [#allocation2]  }
   0x6   :  { %v162_v6 = vld [vmem:[%s281_s2] ss:$0 sm:$0xff]  ;;  %s151_s26 = sshll.u32 %s228_s1, 4  ;;  %s152_s26 = int_to_ptr.vmem [resolvable:$true] %s151_s26 }
   0x7   :  { %188 = vmatpush3.bf16.msra.mxu0 %v201_v1  ;;  %s206_s0 = scalar_lea.vmem %s152_s26, 256  ;;  %p211_p1 = scmp.lt.s32.totalorder %s152_s26, %s152_s26 }
   0x8   :  { %189 = vmatprep.subr.bf16.mxu0 %v202_v2  ;;  %p207_p0 = scmp.ne.s32.totalorder %s152_s26, %s206_s0  ;;  %p212_p2 = scmp.lt.s32.totalorder %s206_s0, %s206_s0 }
   0xa   :  { %p213_p3 = por %p212_p2, %p211_p1 }
   0xb   :  { %190 = vmatpush3.bf16.msra.mxu0 %v202_v2 }
   0xc   :  { %191 = vmatprep.subr.bf16.mxu0 %v203_v4  ;;  %p214_p4 = pnand %p213_p3, %p207_p0 }
   0xf   :  { %192 = vmatpush3.bf16.msra.mxu0 %v203_v4 }
  0x12   :  { %194 = vmatmul.mubr.msk.bf16.vlgmr.msra.gmra.mxu0 %vm69_vm0, %v205_v5 }
  0xd2   :  { %v195_v7 = vpop.f32.mrf.mxu0 }
  0xd3   :  { %v119_v8 = vadd.f32 %v195_v7, %v162_v6 }
  0xd4   :  { %v110_v9 = vpop.f32.mrf.mxu0 }
  0xd5   :  { %v177_v10 = vpack.c.bf16 %v119_v8, %v119_v8  ;;  %v111_v11 = vadd.f32 %v162_v6, %v110_v9 }
  0xd6   :  { %v196_v12 = vpop.f32.mrf.mxu0 }
  0xd7   :  { %144 = vst.msk [vmem:[#allocation2 + $0x8] sm:$0xf] %vm141_vm1, %v177_v10  ;;  %v175_v13 = vpack.c.bf16 %v111_v11, %v111_v11  ;;  %v122_v14 = vadd.f32 %v196_v12, %v162_v6 }
  0xd8   :  { %v113_v15 = vpop.f32.mrf.mxu0 }
  0xd9   :  { %142 = vst.msk [vmem:[#allocation2] sm:$0xf] %vm141_vm1, %v175_v13  ;;  %v178_v16 = vpack.c.bf16 %v122_v14, %v122_v14  ;;  %v114_v17 = vadd.f32 %v162_v6, %v113_v15 }
  0xdb   :  { %145 = vst.msk [vmem:[#allocation2 + $0xc] sm:$0xf] %vm141_vm1, %v178_v16  ;;  %v176_v18 = vpack.c.bf16 %v114_v17, %v114_v17 }
  0xdd   :  { %143 = vst.msk [vmem:[#allocation2 + $0x4] sm:$0xf] %vm141_vm1, %v176_v18 }
  0xde   :  { %217 = shalt.err (!%p214_p4)
}
  0xdf   :  { %s229_s2 = smov 64   ;;  %s230_s27 = smov 4  }
  0xe0   :  { %157 = dma.vmem_to_hbm [thread:$0]  %s152_s26, 256, %s282_s3, [#allocation3], %s229_s2, %s229_s2, %s230_s27  }
  0xe1   :  { %226 = dma.done.wait [#allocation3], 256  }
  0xe2   :  { %227 = vsyncadd [#allocation3], 4294967040 }
  0xe3   :  { %161 = vsyncpa [#allocation3], 1 }

</bundles_post_ra>
